<compile_context>
chip_gen: v5e
topology: v5e:2x2
jax: 0.10.0
libtpu: 0.0.40
codegen_flags: <defaults>
</compile_context>

<pallas_src>
import functools

import jax
import jax.numpy as jnp
from jax import lax
from jax.experimental import pallas as pl
from jax.experimental.pallas import tpu as pltpu


def _round_up(x: int, m: int) -> int:
    return ((x + m - 1) // m) * m


def _vmem_capacity_bytes() -> int:
    try:
        return int(pltpu.get_tpu_info().vmem_capacity_bytes)
    except Exception:
        return 64 * 1024 * 1024   # conservative: v7x per-TensorCore VMEM


def _pick_tile_n(n: int, c: int, dtype_bytes: int, sub_mult: int,
                 budget_bytes: int) -> int:
    # Working-set model per row of the tile:
    #   * up to 3x-buffered native-dtype prediction rows (lane-padded C)
    #   * ~6 live 32-bit (row, C_pad) temporaries (logits f32, shifted,
    #     exp(shifted), column iota, onehot, select result)
    c_pad = _round_up(c, 128)
    per_row = c_pad * (3 * dtype_bytes + 6 * 4)
    tile = budget_bytes // max(per_row, 1)
    tile = max(sub_mult, min(2048, tile))
    tile = (tile // sub_mult) * sub_mult          # per-dtype sublane packing
    tile = min(tile, _round_up(n, sub_mult))      # never bigger than needed
    return max(sub_mult, tile)


def _focal_loss_kernel(*refs, gamma: float, total_n: int, tile_n: int,
                       has_weights: bool, tgt_resident: bool):
    if has_weights:
        pred_ref, tgt_ref, w_ref, out_ref = refs
    else:
        pred_ref, tgt_ref, out_ref = refs
        w_ref = None

    i = pl.program_id(0)

    logits = pred_ref[...].astype(jnp.float32)                      # (tn, C)
    tn, C = logits.shape

    # Numerically stable log-softmax along the lane (class) axis.
    m = jnp.max(logits, axis=-1, keepdims=True)                     # (tn, 1)
    shifted = logits - m                                             # (tn, C)
    sum_exp = jnp.sum(jnp.exp(shifted), axis=-1, keepdims=True)      # (tn, 1)
    lse = jnp.log(sum_exp)                                           # (tn, 1)

    # Target column for this tile (resident buffer sliced in-kernel, or a
    # per-block DMA'd tile for very large N).
    if tgt_resident:
        start = pl.multiple_of(i * tile_n, tile_n)
        tgt = tgt_ref[pl.ds(start, tile_n), :]                       # (tn, 1)
    else:
        tgt = tgt_ref[...]                                           # (tn, 1)

    # Gather the target-class column via a one-hot mask (no dynamic gather on TPU).
    col = lax.broadcasted_iota(jnp.int32, (tn, C), 1)                # (tn, C)
    onehot = col == tgt                                              # (tn, C)

    shifted_t = jnp.sum(jnp.where(onehot, shifted, 0.0),
                        axis=-1, keepdims=True)                      # (tn, 1)
    logp_t = shifted_t - lse                                         # (tn, 1)

    # p_t straight from the (tn,1) column on the EUP -- no second (tn,C)
    # select + cross-lane reduction.  logp_t <= 0 by construction so p_t <= 1.
    p_t = jnp.exp(logp_t)                                            # (tn, 1)

    one_minus_p = jnp.maximum(1.0 - p_t, 0.0)
    g = float(gamma)
    if g == 0.0:
        focal = jnp.ones_like(one_minus_p)
    elif g == float(int(g)) and 0 < int(g) <= 8:
        focal = one_minus_p
        for _ in range(int(g) - 1):
            focal = focal * one_minus_p
    else:
        focal = jnp.power(one_minus_p, g)

    loss = -(focal * logp_t)                                         # (tn, 1)

    if has_weights:
        w_t = jnp.sum(jnp.where(onehot, w_ref[...], 0.0),
                      axis=-1, keepdims=True)                        # (tn, 1)
        loss = loss * w_t

    # Mask rows of the (possibly padded) last block that lie past N.
    row = lax.broadcasted_iota(jnp.int32, (tn, 1), 0)
    valid = (i * tile_n + row) < total_n
    loss = jnp.where(valid, loss, 0.0)

    block_sum = jnp.sum(loss)                                        # scalar

    # Lane-dense (8,128) output block: uniform splat of the partial sum
    # (single broadcast + unmasked vst).  Wrapper divides by the exact 1024x.
    out_ref[...] = jnp.broadcast_to(block_sum, (8, 128))


def focal_loss(predictions, target, weights=None, gamma: float = 2.0,
               tile_n: int | None = None):
    """predictions: (N, C) float (any dtype), target: (N,) int, weights: (C,) or None."""
    N, C = predictions.shape
    dtype_bytes = jnp.dtype(predictions.dtype).itemsize
    sub_mult = max(8, 32 // max(dtype_bytes, 1))   # 8 / 16 / 32 rows for 4/2/1-byte

    # Size everything off the actual part (v7x: 64 MiB VMEM per TC).
    vmem_cap = _vmem_capacity_bytes()
    vmem_limit = int(min(vmem_cap * 5 // 8, 64 * 1024 * 1024))
    tile_budget = int(min(12 * 1024 * 1024, vmem_limit // 3))

    if tile_n is None:
        tile_n = _pick_tile_n(N, C, dtype_bytes, sub_mult, tile_budget)
    tile_n = max(sub_mult, _round_up(int(tile_n), sub_mult))
    num_blocks = pl.cdiv(N, tile_n)
    n_padded = num_blocks * tile_n
    # TODO(synk): for vocab-scale C where a single (tile_n, C) row tile cannot
    # fit VMEM, add a second ("arbitrary") grid axis over C with an online
    # (flash-style) max / log-sum-exp instead of shrinking tile_n to the floor.

    # Targets: pad to a whole number of tiles (padded rows are masked in-kernel).
    tgt = target.reshape(-1).astype(jnp.int32)
    if n_padded > N:
        tgt = jnp.pad(tgt, (0, n_padded - N))
    tgt2d = tgt.reshape(n_padded, 1)

    # Keep the whole target resident in VMEM (one contiguous copy, no per-step
    # narrow strided DMA) unless its lane-padded footprint gets large.
    tgt_resident = (_round_up(n_padded, 8) * 128 * 4) <= (2 * 1024 * 1024)
    if tgt_resident:
        tgt_spec = pl.BlockSpec((n_padded, 1), lambda i: (0, 0))
    else:
        tgt_spec = pl.BlockSpec((tile_n, 1), lambda i: (i, 0))

    # Predictions: native dtype streams straight from HBM; small tiles get a
    # third pipeline buffer to keep the DMA hidden after the compute trim.
    pred_tile_bytes = tile_n * _round_up(C, 128) * dtype_bytes
    pred_spec = None
    if num_blocks > 2 and pred_tile_bytes <= 2 * 1024 * 1024:
        try:
            pred_spec = pl.BlockSpec((tile_n, C), lambda i: (i, 0),
                                     pipeline_mode=pl.Buffered(3))
        except TypeError:
            pred_spec = None
    if pred_spec is None:
        pred_spec = pl.BlockSpec((tile_n, C), lambda i: (i, 0))

    has_weights = weights is not None
    inputs = [predictions, tgt2d]
    in_specs = [pred_spec, tgt_spec]
    if has_weights:
        inputs.append(weights.reshape(1, C).astype(jnp.float32))
        in_specs.append(pl.BlockSpec((1, C), lambda i: (0, 0)))   # resident

    kernel = functools.partial(
        _focal_loss_kernel,
        gamma=float(gamma), total_n=N, tile_n=tile_n,
        has_weights=has_weights, tgt_resident=tgt_resident,
    )

    cost = pl.CostEstimate(
        flops=10 * N * C,                       # max/sub/cmp/select/sum per element
        transcendentals=N * C + 2 * N,          # exp(shifted) + per-row exp/log
        bytes_accessed=N * C * dtype_bytes + n_padded * 4
                       + (C * 4 if has_weights else 0)
                       + num_blocks * 8 * 128 * 4,
    )

    partials = pl.pallas_call(
        kernel,
        out_shape=jax.ShapeDtypeStruct((num_blocks * 8, 128), jnp.float32),
        grid_spec=pltpu.PrefetchScalarGridSpec(
            num_scalar_prefetch=0,
            grid=(num_blocks,),
            in_specs=in_specs,
            out_specs=pl.BlockSpec((8, 128), lambda i: (i, 0)),
        ),
        # "parallel": independent per-block partials, megacore-shardable on v7x.
        compiler_params=pltpu.CompilerParams(
            dimension_semantics=("parallel",),
            vmem_limit_bytes=vmem_limit,
        ),
        cost_estimate=cost,
    )(*inputs)

    # Each block wrote 1024 identical copies of its partial sum (exact 2^10
    # scaling), so divide it back out together with the mean over N.
    return jnp.sum(partials) / (jnp.float32(N) * 1024.0)


def _focal_loss_ref(predictions, target, weights=None, gamma=2.0):
    logp = jax.nn.log_softmax(predictions.astype(jnp.float32), axis=-1)
    logp_t = jnp.take_along_axis(logp, target.reshape(-1, 1), axis=1)
    p_t = jnp.exp(logp_t)
    loss = -((1.0 - p_t) ** gamma) * logp_t
    if weights is not None:
        loss = loss * jnp.take(weights, target).reshape(-1, 1)
    return jnp.mean(loss)


if __name__ == "__main__":
    key = jax.random.PRNGKey(0)
    k1, k2 = jax.random.split(key)
    N, C = 100, 32
    predictions = jax.random.normal(k1, (N, C), dtype=jnp.float32)
    target = jax.random.randint(k2, (N,), 0, C, dtype=jnp.int32)
    weights = jnp.linspace(0.5, 1.5, C, dtype=jnp.float32)

    # 1) auto tile size (single block here), with class weights.
    out = jax.block_until_ready(focal_loss(predictions, target, weights=weights, gamma=2.0))
    ref = _focal_loss_ref(predictions, target, weights=weights, gamma=2.0)
    assert jnp.allclose(out, ref, atol=1e-5, rtol=1e-5), (out, ref)

    # 2) forced small tile -> multi-block "parallel" grid, masked remainder block,
    #    resident target slicing and the Buffered(3) predictions path.
    out2 = jax.block_until_ready(focal_loss(predictions, target, weights=None, gamma=2.0, tile_n=16))
    ref2 = _focal_loss_ref(predictions, target, weights=None, gamma=2.0)
    assert jnp.allclose(out2, ref2, atol=1e-5, rtol=1e-5), (out2, ref2)

    # 3) native bf16 predictions go straight into the kernel (no wrapper upcast).
    pred_bf16 = predictions.astype(jnp.bfloat16)
    out3 = jax.block_until_ready(focal_loss(pred_bf16, target, weights=weights, gamma=2.0))
    ref3 = _focal_loss_ref(pred_bf16.astype(jnp.float32), target, weights=weights, gamma=2.0)
    assert jnp.allclose(out3, ref3, atol=2e-3, rtol=2e-3), (out3, ref3)

    print("KERNEL_OK")
</pallas_src>

<mosaic_0001>
module attributes {stable_mosaic.version = 11 : i64} {
  func.func @_focal_loss_kernel(%arg0: i32, %arg1: memref<104x32xf32, #tpu.memory_space<vmem>>, %arg2: memref<104x1xi32, #tpu.memory_space<vmem>>, %arg3: memref<1x32xf32, #tpu.memory_space<vmem>>, %arg4: memref<8x128xf32, #tpu.memory_space<vmem>>) attributes {dimension_semantics = [#tpu.dimension_semantics<parallel>], iteration_bounds = array<i64: 1>, scalar_prefetch = 0 : i64, scratch_operands = 0 : i64, tpu.core_type = #tpu.core_type<tc>, window_params = [{transform_indices = @transform_0, window_bounds = array<i64: 104, 32>}, {pipeline_mode = #tpu.pipeline_mode<synchronous>, transform_indices = @transform_1, window_bounds = array<i64: 104, 1>}, {pipeline_mode = #tpu.pipeline_mode<synchronous>, transform_indices = @transform_2, window_bounds = array<i64: 1, 32>}, {transform_indices = @transform_3, window_bounds = array<i64: 8, 128>}]} {
    %c0 = arith.constant 0 : index
    %c0_0 = arith.constant 0 : index
    %0 = vector.load %arg1[%c0, %c0_0] : memref<104x32xf32, #tpu.memory_space<vmem>>, vector<104x32xf32>
    %cst = arith.constant dense<0xFF800000> : vector<104xf32>
    %1 = vector.multi_reduction <maximumf>, %0, %cst [1] : vector<104x32xf32> to vector<104xf32>
    %2 = vector.shape_cast %1 : vector<104xf32> to vector<104x1xf32>
    %3 = vector.broadcast %2 : vector<104x1xf32> to vector<104x32xf32>
    %4 = arith.subf %0, %3 : vector<104x32xf32>
    %5 = math.exp %4 : vector<104x32xf32>
    %cst_1 = arith.constant dense<0.000000e+00> : vector<104xf32>
    %6 = vector.multi_reduction <add>, %5, %cst_1 [1] : vector<104x32xf32> to vector<104xf32>
    %7 = vector.shape_cast %6 : vector<104xf32> to vector<104x1xf32>
    %8 = math.log %7 : vector<104x1xf32>
    %c104_i32 = arith.constant 104 : i32
    %9 = arith.muli %arg0, %c104_i32 : i32
    %10 = tpu.assume_multiple %9, 104 : i32
    %11 = arith.index_cast %10 : i32 to index
    %c0_2 = arith.constant 0 : index
    %12 = vector.load %arg2[%11, %c0_2] : memref<104x1xi32, #tpu.memory_space<vmem>>, vector<104x1xi32>
    %13 = tpu.iota {dimensions = array<i32: 1>} : vector<104x32xi32>
    %14 = vector.broadcast %12 : vector<104x1xi32> to vector<104x32xi32>
    %15 = arith.cmpi eq, %13, %14 : vector<104x32xi32>
    %cst_3 = arith.constant 0.000000e+00 : f32
    %16 = vector.broadcast %cst_3 : f32 to vector<104x32xf32>
    %17 = arith.select %15, %4, %16 : vector<104x32xi1>, vector<104x32xf32>
    %cst_4 = arith.constant dense<0.000000e+00> : vector<104xf32>
    %18 = vector.multi_reduction <add>, %17, %cst_4 [1] : vector<104x32xf32> to vector<104xf32>
    %19 = vector.shape_cast %18 : vector<104xf32> to vector<104x1xf32>
    %20 = arith.subf %19, %8 : vector<104x1xf32>
    %21 = math.exp %20 : vector<104x1xf32>
    %cst_5 = arith.constant 1.000000e+00 : f32
    %22 = vector.broadcast %cst_5 : f32 to vector<104x1xf32>
    %23 = arith.subf %22, %21 : vector<104x1xf32>
    %cst_6 = arith.constant 0.000000e+00 : f32
    %24 = vector.broadcast %cst_6 : f32 to vector<104x1xf32>
    %25 = arith.maximumf %23, %24 : vector<104x1xf32>
    %26 = arith.mulf %25, %25 : vector<104x1xf32>
    %27 = arith.mulf %26, %20 : vector<104x1xf32>
    %cst_7 = arith.constant 0.000000e+00 : f32
    %28 = vector.broadcast %cst_7 : f32 to vector<104x1xf32>
    %29 = arith.subf %28, %27 : vector<104x1xf32>
    %c0_8 = arith.constant 0 : index
    %c0_9 = arith.constant 0 : index
    %30 = vector.load %arg3[%c0_8, %c0_9] : memref<1x32xf32, #tpu.memory_space<vmem>>, vector<1x32xf32>
    %cst_10 = arith.constant 0.000000e+00 : f32
    %31 = vector.shape_cast %30 : vector<1x32xf32> to vector<1x32xf32>
    %32 = vector.broadcast %31 : vector<1x32xf32> to vector<104x32xf32>
    %33 = vector.broadcast %cst_10 : f32 to vector<104x32xf32>
    %34 = arith.select %15, %32, %33 : vector<104x32xi1>, vector<104x32xf32>
    %cst_11 = arith.constant dense<0.000000e+00> : vector<104xf32>
    %35 = vector.multi_reduction <add>, %34, %cst_11 [1] : vector<104x32xf32> to vector<104xf32>
    %36 = vector.shape_cast %35 : vector<104xf32> to vector<104x1xf32>
    %37 = arith.mulf %29, %36 : vector<104x1xf32>
    %38 = tpu.iota {dimensions = array<i32: 0>} : vector<104x1xi32>
    %c104_i32_12 = arith.constant 104 : i32
    %39 = arith.muli %arg0, %c104_i32_12 : i32
    %40 = vector.broadcast %39 : i32 to vector<104x1xi32>
    %41 = arith.addi %40, %38 : vector<104x1xi32>
    %c100_i32 = arith.constant 100 : i32
    %42 = vector.broadcast %c100_i32 : i32 to vector<104x1xi32>
    %43 = arith.cmpi slt, %41, %42 : vector<104x1xi32>
    %cst_13 = arith.constant 0.000000e+00 : f32
    %44 = vector.broadcast %cst_13 : f32 to vector<104x1xf32>
    %45 = arith.select %43, %37, %44 : vector<104x1xi1>, vector<104x1xf32>
    %46 = vector.shape_cast %45 : vector<104x1xf32> to vector<1x104x1xf32>
    %cst_14 = arith.constant dense<0.000000e+00> : vector<1xf32>
    %47 = vector.multi_reduction <add>, %46, %cst_14 [1, 2] : vector<1x104x1xf32> to vector<1xf32>
    %48 = vector.shape_cast %47 : vector<1xf32> to vector<1x1x1xf32>
    %49 = vector.extract %48[0, 0, 0] : f32 from vector<1x1x1xf32>
    %50 = vector.broadcast %49 : f32 to vector<8x128xf32>
    %c0_15 = arith.constant 0 : index
    %c0_16 = arith.constant 0 : index
    %51 = vector.load %arg4[%c0_15, %c0_16] : memref<8x128xf32, #tpu.memory_space<vmem>>, vector<8x128xf32>
    tpu.vector_store %arg4[%c0_15, %c0_16], %50 {strides = array<i32>} : memref<8x128xf32, #tpu.memory_space<vmem>>, vector<8x128xf32>,
    return
  }
  func.func @transform_0(%arg0: i32) -> (i32, i32) {
    %c0_i32 = arith.constant 0 : i32
    %c0_i32_0 = arith.constant 0 : i32
    return %arg0, %c0_i32 : i32, i32
  }
  func.func @transform_1(%arg0: i32) -> (i32, i32) {
    %c0_i32 = arith.constant 0 : i32
    %c0_i32_0 = arith.constant 0 : i32
    %c0_i32_1 = arith.constant 0 : i32
    return %c0_i32, %c0_i32_0 : i32, i32
  }
  func.func @transform_2(%arg0: i32) -> (i32, i32) {
    %c0_i32 = arith.constant 0 : i32
    %c0_i32_0 = arith.constant 0 : i32
    %c0_i32_1 = arith.constant 0 : i32
    return %c0_i32, %c0_i32_0 : i32, i32
  }
  func.func @transform_3(%arg0: i32) -> (i32, i32) {
    %c0_i32 = arith.constant 0 : i32
    %c0_i32_0 = arith.constant 0 : i32
    return %arg0, %c0_i32 : i32, i32
  }
}

</mosaic_0001>

<bundles_post_ra>
// kernel: tpu_custom_call.1
= control target key start
LH: loop header
LB: loop body
LE: loop exit
PB: predicated region body
PF: predicated region fallthrough
CT: control target
= control target key end

     0   :  { %vm28_vm0 = vcmask 261120   ;;  %v685_v9 = vmov 0   ;;  %s1107_s0 = inlined_call_operand.vmem [shape: f32[100,32], index: 0, kind: input, shape index: {}]   ;;  %s1108_s1 = inlined_call_operand.vmem [shape: s32[104,1], index: 1, kind: input, shape index: {}]   ;;  %s1109_s2 = inlined_call_operand.vmem [shape: f32[1,32], index: 2, kind: input, shape index: {}]   ;;  %s1110_s3 = inlined_call_operand.hbm [shape: f32[8,128], index: 3, kind: output, shape index: {}]  }
   0x1   :  { %v710_v0 = vld [vmem:[%s1107_s0 + $0x20] sm:$0xff]  ;;  %v715_v1 = vld [vmem:[%s1107_s0 + $0x10] sm:$0xff]  ;;  %v731_v6 = vld [vmem:[%s1107_s0 + $0x28] sm:$0xff]  ;;  %577 = vset.pattern.permute.xlu2 %v685_v9  ;;  %578 = vset.pattern.permute.xlu0 %v685_v9 }
   0x2   :  { %v720_v2 = vld [vmem:[%s1107_s0] sm:$0xff]  ;;  %v41_v3 = vsel %vm28_vm0, %v710_v0, -inf  ;;  %v35_v4 = vsel %vm28_vm0, %v715_v1, -inf  ;;  %v736_v7 = vld [vmem:[%s1107_s0 + $0x18] sm:$0xff]  ;;  %v741_v8 = vld [vmem:[%s1107_s0 + $0x8] sm:$0xff] }
   0x3   :  { %v29_v5 = vsel %vm28_vm0, %v720_v2, -inf  ;;  %42 = vmax.xlane.f32.xlu2 %v41_v3  ;;  %36 = vmax.xlane.f32.xlu1 %v35_v4 }
   0x4   :  { %30 = vmax.xlane.f32.xlu0 %v29_v5 }
   0x5   :  { %8 = vsyncpa [#allocation3], 0  ;;  %579 = vset.pattern.permute.xlu1 %v685_v9  ;;  %v44_v10 = vsel %vm28_vm0, %v731_v6, -inf  ;;  %v38_v11 = vsel %vm28_vm0, %v736_v7, -inf  ;;  %v32_v12 = vsel %vm28_vm0, %v741_v8, -inf  ;;  %v752_v13 = vld [vmem:[%s1107_s0 + $0x40] sm:$0xff]  ;;  %v187_v63 = vlaneseq }
   0x6   :  { %v757_v14 = vld [vmem:[%s1107_s0 + $0x38] sm:$0xff]  ;;  %v762_v15 = vld [vmem:[%s1107_s0 + $0x30] sm:$0xff]  ;;  %v53_v16 = vsel %vm28_vm0, %v752_v13, -inf  ;;  %v778_v20 = vld [vmem:[%s1107_s0 + $0x48] sm:$0xff]  ;;  %vm520_vm14 = vcmask 7168   ;;  %s564_s11 = sshll.u32 %s1110_s3, 4  ;;  %s565_s11 = int_to_ptr.hbm [resolvable:$true] %s564_s11 }
   0x7   :  { %v50_v17 = vsel %vm28_vm0, %v757_v14, -inf  ;;  %v47_v18 = vsel %vm28_vm0, %v762_v15, -inf  ;;  %v773_v19 = vld [vmem:[%s1107_s0 + $0x50] sm:$0xff]  ;;  %v56_v22 = vsel %vm28_vm0, %v778_v20, -inf  ;;  %v787_v23 = vld [vmem:[%s1107_s0 + $0x58] sm:$0xff]  ;;  %v794_v25 = vld [vmem:[%s1107_s0 + $0x60] sm:$0xff] }
   0x8   :  { %v59_v21 = vsel %vm28_vm0, %v773_v19, -inf  ;;  %v62_v24 = vsel %vm28_vm0, %v787_v23, -inf  ;;  %v174_v26 = vld [vmem:[%s1108_s1] sm:$0xff]  ;;  %v65_v27 = vsel %vm28_vm0, %v794_v25, -inf  ;;  %v175_v28 = vld [vmem:[%s1108_s1 + $0x8] sm:$0xff]  ;;  %v177_v29 = vld [vmem:[%s1108_s1 + $0x18] sm:$0xff] }
   0x9   :  { %v180_v30 = vld [vmem:[%s1108_s1 + $0x30] sm:$0xff]  ;;  %v178_v31 = vld [vmem:[%s1108_s1 + $0x20] sm:$0xff]  ;;  %v183_v32 = vld [vmem:[%s1108_s1 + $0x48] sm:$0xff]  ;;  %v857_v5 = vand.u32 127, %v187_v63  ;;  %s686_s12 = smov [#allocation2]  }
   0xa   :  { %v179_v33 = vld [vmem:[%s1108_s1 + $0x28] sm:$0xff]  ;;  %v176_v34 = vld [vmem:[%s1108_s1 + $0x10] sm:$0xff]  ;;  %v186_v35 = vld [vmem:[%s1108_s1 + $0x60] sm:$0xff]  ;;  %s562_s13 = sshll.u32 %s686_s12, 4  ;;  %s563_s13 = int_to_ptr.vmem [resolvable:$true] %s562_s13 }
   0xb   :  { %45 = vmax.xlane.f32.xlu2 %v44_v10  ;;  %39 = vmax.xlane.f32.xlu1 %v38_v11  ;;  %v181_v36 = vld [vmem:[%s1108_s1 + $0x38] sm:$0xff]  ;;  %v182_v37 = vld [vmem:[%s1108_s1 + $0x40] sm:$0xff]  ;;  %v184_v38 = vld [vmem:[%s1108_s1 + $0x50] sm:$0xff] }
   0xc   :  { %33 = vmax.xlane.f32.xlu0 %v32_v12  ;;  %v185_v39 = vld [vmem:[%s1108_s1 + $0x58] sm:$0xff] }
  0x13   :  { %54 = vmax.xlane.f32.xlu2 %v53_v16  ;;  %51 = vmax.xlane.f32.xlu1 %v50_v17 }
  0x14   :  { %48 = vmax.xlane.f32.xlu0 %v47_v18 }
  0x1b   :  { %60 = vmax.xlane.f32.xlu1 %v59_v21 }
  0x1c   :  { %57 = vmax.xlane.f32.xlu0 %v56_v22 }
  0x23   :  { %63 = vmax.xlane.f32.xlu1 %v62_v24 }
  0x2b   :  { %190 = vperm.xlu2 %577, %v174_v26   ;;  %66 = vmax.xlane.f32.xlu1 %v65_v27 }
  0x30   :  { %193 = vperm.xlu0 %578, %v175_v28  }
  0x33   :  { %199 = vperm.xlu2 %577, %v177_v29  }
  0x38   :  { %208 = vperm.xlu0 %578, %v180_v30  }
  0x3b   :  { %202 = vperm.xlu2 %577, %v178_v31  }
  0x40   :  { %217 = vperm.xlu0 %578, %v183_v32  }
  0x43   :  { %205 = vperm.xlu2 %577, %v179_v33  }
  0x44   :  { %196 = vperm.xlu1 %579, %v176_v34  }
  0x48   :  { %226 = vperm.xlu0 %578, %v186_v35  }
  0x4b   :  { %211 = vperm.xlu2 %577, %v181_v36  }
  0x4c   :  { %214 = vperm.xlu1 %579, %v182_v37  }
  0x53   :  { %220 = vperm.xlu2 %577, %v184_v38  }
  0x54   :  { %223 = vperm.xlu1 %579, %v185_v39  }
  0x76   :  { %v43_v40 = vpop.xlane.xlu2 %42  ;;  %v37_v41 = vpop.xlane.xlu1 %36 }
  0x77   :  { %v838_v42 = vsub.f32 %v715_v1, %v37_v41  ;;  %v31_v43 = vpop.xlane.xlu0 %30  ;;  %v844_v51 = vsub.f32 %v710_v0, %v43_v40 }
  0x78   :  { %v68_v44 = vsub.f32 %v720_v2, %v31_v43 }
  0x79   :  { %v85_v45 = vmul.f32 1.442695, %v838_v42  ;;  %v89_v59 = vmul.f32 1.442695, %v844_v51 }
  0x7a   :  { %v81_v46 = vmul.f32 1.442695, %v68_v44 }
  0x7b   :  { %581 = vpow2.f32 %v85_v45 }
  0x7c   :  { %583 = vpow2.f32 %v81_v46 }
  0x7e   :  { %v46_v47 = vpop.xlane.xlu2 %45  ;;  %v40_v48 = vpop.xlane.xlu1 %39 }
  0x7f   :  { %v71_v49 = vsub.f32 %v736_v7, %v40_v48  ;;  %v34_v50 = vpop.xlane.xlu0 %33  ;;  %v848_v53 = vsub.f32 %v731_v6, %v46_v47 }
  0x80   :  { %v69_v52 = vsub.f32 %v741_v8, %v34_v50 }
  0x81   :  { %v87_v54 = vmul.f32 1.442695, %v71_v49  ;;  %v582_v55 = vpop.eup %581  ;;  %v91_v61 = vmul.f32 1.442695, %v848_v53 }
  0x82   :  { %v83_v56 = vmul.f32 1.442695, %v69_v52  ;;  %v584_v57 = vpop.eup %583  ;;  %v113_v58 = vsel %vm28_vm0, %v582_v55, 0.0 }
  0x83   :  { %585 = vpow2.f32 %v87_v54  ;;  %114 = vadd.xlane.f32.xlu0 %v113_v58  ;;  %v107_v60 = vsel %vm28_vm0, %v584_v57, 0.0 }
  0x84   :  { %108 = vadd.xlane.f32.xlu2 %v107_v60  ;;  %587 = vpow2.f32 %v83_v56 }
  0x85   :  { %589 = vpow2.f32 %v89_v59 }
  0x86   :  { %v55_v62 = vpop.xlane.xlu2 %54  ;;  %591 = vpow2.f32 %v91_v61  ;;  %v52_v11 = vpop.xlane.xlu1 %51 }
  0x87   :  { %v49_v0 = vpop.xlane.xlu0 %48  ;;  %v75_v28 = vsub.f32 %v757_v14, %v52_v11  ;;  %v906_v45 = vsub.f32 %v752_v13, %v55_v62 }
  0x88   :  { %v74_v1 = vsub.f32 %v762_v15, %v49_v0 }
  0x89   :  { %v586_v2 = vpop.eup %585  ;;  %v95_v31 = vmul.f32 1.442695, %v75_v28 }
  0x8a   :  { %v588_v3 = vpop.eup %587  ;;  %v116_v4 = vsel %vm28_vm0, %v586_v2, 0.0  ;;  %v93_v7 = vmul.f32 1.442695, %v74_v1 }
  0x8b   :  { %v110_v6 = vsel %vm28_vm0, %v588_v3, 0.0  ;;  %v590_v8 = vpop.eup %589 }
  0x8c   :  { %117 = vadd.xlane.f32.xlu2 %v116_v4  ;;  %111 = vadd.xlane.f32.xlu1 %v110_v6  ;;  %v592_v10 = vpop.eup %591  ;;  %593 = vpow2.f32 %v93_v7  ;;  %v119_v17 = vsel %vm28_vm0, %v590_v8, 0.0 }
  0x8d   :  { %v122_v16 = vsel %vm28_vm0, %v592_v10, 0.0 }
  0x8e   :  { %v860_v9 = vpop.permute.xlu2 %190  ;;  %v61_v26 = vpop.xlane.xlu1 %60 }
  0x8f   :  { %vm228_vm1 = vcmp.eq.s32.totalorder %v857_v5, %v860_v9  ;;  %v58_v22 = vpop.xlane.xlu0 %57  ;;  %v78_v41 = vsub.f32 %v773_v19, %v61_v26 }
  0x90   :  { %v241_v12 = vsel %vm228_vm1, %v68_v44, 0.0  ;;  %v873_v24 = vsub.f32 %v778_v20, %v58_v22 }
  0x91   :  { %v254_v15 = vsel %vm28_vm0, %v241_v12, 0.0  ;;  %v101_v46 = vmul.f32 1.442695, %v78_v41 }
  0x92   :  { %255 = vadd.xlane.f32.xlu0 %v254_v15  ;;  %v594_v21 = vpop.eup %593  ;;  %v99_v29 = vmul.f32 1.442695, %v873_v24 }
  0x93   :  { %v125_v27 = vsel %vm28_vm0, %v594_v21, 0.0 }
  0x94   :  { %123 = vadd.xlane.f32.xlu2 %v122_v16  ;;  %120 = vadd.xlane.f32.xlu1 %v119_v17  ;;  %595 = vpow2.f32 %v99_v29 }
  0x95   :  { %597 = vpow2.f32 %v95_v31 }
  0x96   :  { %v870_v18 = vpop.permute.xlu2 %199  ;;  %v64_v14 = vpop.xlane.xlu1 %63  ;;  %599 = vpow2.f32 %v101_v46 }
  0x97   :  { %vm231_vm2 = vcmp.eq.s32.totalorder %v857_v5, %v870_v18 }
  0x98   :  { %v244_v20 = vsel %vm231_vm2, %v71_v49, 0.0  ;;  %v97_v49 = vmul.f32 1.442695, %v906_v45 }
  0x99   :  { %v263_v33 = vsel %vm28_vm0, %v244_v20, 0.0 }
  0x9a   :  { %v596_v36 = vpop.eup %595  ;;  %601 = vpow2.f32 %v97_v49 }
  0x9b   :  { %v598_v38 = vpop.eup %597  ;;  %v134_v39 = vsel %vm28_vm0, %v596_v36, 0.0 }
  0x9c   :  { %126 = vadd.xlane.f32.xlu2 %v125_v27  ;;  %v128_v43 = vsel %vm28_vm0, %v598_v38, 0.0  ;;  %v600_v57 = vpop.eup %599 }
  0x9d   :  { %v137_v60 = vsel %vm28_vm0, %v600_v57, 0.0 }
  0x9e   :  { %v880_v30 = vpop.permute.xlu2 %202  ;;  %v67_v44 = vpop.xlane.xlu1 %66 }
  0x9f   :  { %vm232_vm5 = vcmp.eq.s32.totalorder %v857_v5, %v880_v30  ;;  %v80_v50 = vsub.f32 %v794_v25, %v67_v44 }
  0xa0   :  { %v245_v48 = vsel %vm232_vm5, %v844_v51, 0.0  ;;  %v602_v61 = vpop.eup %601 }
  0xa1   :  { %v105_v55 = vmul.f32 1.442695, %v80_v50  ;;  %v131_v62 = vsel %vm28_vm0, %v602_v61, 0.0 }
  0xa2   :  { %v885_v32 = vpop.permute.xlu0 %193 }
  0xa3   :  { %vm229_vm3 = vcmp.eq.s32.totalorder %v857_v5, %v885_v32  ;;  %603 = vpow2.f32 %v105_v55 }
  0xa4   :  { %v242_v34 = vsel %vm229_vm3, %v69_v52, 0.0  ;;  %264 = vadd.xlane.f32.xlu2 %v263_v33  ;;  %v266_v52 = vsel %vm28_vm0, %v245_v48, 0.0 }
  0xa5   :  { %v257_v35 = vsel %vm28_vm0, %v242_v34, 0.0 }
  0xa6   :  { %258 = vadd.xlane.f32.xlu1 %v257_v35  ;;  %v894_v37 = vpop.permute.xlu2 %205 }
  0xa7   :  { %vm233_vm9 = vcmp.eq.s32.totalorder %v857_v5, %v894_v37 }
  0xa8   :  { %v246_v7 = vsel %vm233_vm9, %v848_v53, 0.0 }
  0xa9   :  { %v269_v8 = vsel %vm28_vm0, %v246_v7, 0.0 }
  0xaa   :  { %v897_v40 = vpop.permute.xlu0 %208 }
  0xab   :  { %vm234_vm4 = vcmp.eq.s32.totalorder %v857_v5, %v897_v40 }
  0xac   :  { %135 = vadd.xlane.f32.xlu2 %v134_v39  ;;  %v247_v19 = vsel %vm234_vm4, %v74_v1, 0.0  ;;  %v604_v1 = vpop.eup %603 }
  0xad   :  { %v272_v13 = vsel %vm28_vm0, %v247_v19, 0.0  ;;  %v143_v6 = vsel %vm28_vm0, %v604_v1, 0.0 }
  0xae   :  { %129 = vadd.xlane.f32.xlu1 %v128_v43  ;;  %v908_v47 = vpop.permute.xlu2 %211 }
  0xaf   :  { %vm235_vm6 = vcmp.eq.s32.totalorder %v857_v5, %v908_v47 }
  0xb0   :  { %v248_v56 = vsel %vm235_vm6, %v75_v28, 0.0 }
  0xb1   :  { %v275_v59 = vsel %vm28_vm0, %v248_v56, 0.0 }
  0xb2   :  { %v218_v2 = vpop.permute.xlu0 %217 }
  0xb3   :  { %vm237_vm10 = vcmp.eq.s32.totalorder %v857_v5, %v218_v2 }
  0xb4   :  { %273 = vadd.xlane.f32.xlu2 %v272_v13  ;;  %v250_v11 = vsel %vm237_vm10, %v873_v24, 0.0 }
  0xb5   :  { %v281_v53 = vsel %vm28_vm0, %v250_v11, 0.0 }
  0xb6   :  { %267 = vadd.xlane.f32.xlu1 %v266_v52  ;;  %v197_v54 = vpop.permute.xlu1 %196  ;;  %v931_v58 = vpop.permute.xlu2 %220 }
  0xb7   :  { %vm230_vm7 = vcmp.eq.s32.totalorder %v857_v5, %v197_v54  ;;  %vm238_vm8 = vcmp.eq.s32.totalorder %v857_v5, %v931_v58 }
  0xb8   :  { %v243_v51 = vsel %vm230_vm7, %v838_v42, 0.0  ;;  %v79_v42 = vsub.f32 %v787_v23, %v64_v14  ;;  %v251_v0 = vsel %vm238_vm8, %v78_v41, 0.0  ;;  %v949_v23 = vld [vmem:[%s1109_s2] ss:$0 sm:$0xff] }
  0xb9   :  { %v260_v25 = vsel %vm28_vm0, %v243_v51, 0.0  ;;  %v284_v4 = vsel %vm28_vm0, %v251_v0, 0.0  ;;  %v401_v10 = vsel %vm228_vm1, %v949_v23, 0.0  ;;  %v404_v9 = vsel %vm231_vm2, %v949_v23, 0.0 }
  0xba   :  { %261 = vadd.xlane.f32.xlu0 %v260_v25  ;;  %v103_v3 = vmul.f32 1.442695, %v79_v42  ;;  %v227_v12 = vpop.permute.xlu0 %226  ;;  %v414_v15 = vsel %vm28_vm0, %v401_v10, 0.0  ;;  %v423_v24 = vsel %vm28_vm0, %v404_v9, 0.0  ;;  %v407_v29 = vsel %vm234_vm4, %v949_v23, 0.0 }
  0xbb   :  { %vm240_vm11 = vcmp.eq.s32.totalorder %v857_v5, %v227_v12  ;;  %v403_v31 = vsel %vm230_vm7, %v949_v23, 0.0  ;;  %v432_v20 = vsel %vm28_vm0, %v407_v29, 0.0  ;;  %v410_v35 = vsel %vm237_vm10, %v949_v23, 0.0 }
  0xbc   :  { %276 = vadd.xlane.f32.xlu2 %v275_v59  ;;  %605 = vpow2.f32 %v103_v3  ;;  %v253_v22 = vsel %vm240_vm11, %v80_v50, 0.0  ;;  %v420_v14 = vsel %vm28_vm0, %v403_v31, 0.0  ;;  %v406_v36 = vsel %vm233_vm9, %v949_v23, 0.0 }
  0xbd   :  { %v290_v26 = vsel %vm28_vm0, %v253_v22, 0.0  ;;  %v441_v38 = vsel %vm28_vm0, %v410_v35, 0.0  ;;  %v429_v39 = vsel %vm28_vm0, %v406_v36, 0.0  ;;  %v402_v40 = vsel %vm229_vm3, %v949_v23, 0.0 }
  0xbe   :  { %138 = vadd.xlane.f32.xlu1 %v137_v60  ;;  %v215_v17 = vpop.permute.xlu1 %214  ;;  %v417_v41 = vsel %vm28_vm0, %v402_v40, 0.0  ;;  %v413_v43 = vsel %vm240_vm11, %v949_v23, 0.0  ;;  %v405_v32 = vsel %vm232_vm5, %v949_v23, 0.0  ;;  %v408_v49 = vsel %vm235_vm6, %v949_v23, 0.0 }
  0xbf   :  { %vm236_vm12 = vcmp.eq.s32.totalorder %v857_v5, %v215_v17  ;;  %v450_v44 = vsel %vm28_vm0, %v413_v43, 0.0  ;;  %v426_v46 = vsel %vm28_vm0, %v405_v32, 0.0  ;;  %v435_v13 = vsel %vm28_vm0, %v408_v49, 0.0 }
  0xc0   :  { %v249_v27 = vsel %vm236_vm12, %v906_v45, 0.0  ;;  %v409_v37 = vsel %vm236_vm12, %v949_v23, 0.0  ;;  %v411_v30 = vsel %vm238_vm8, %v949_v23, 0.0 }
  0xc1   :  { %v278_v18 = vsel %vm28_vm0, %v249_v27, 0.0  ;;  %v438_v45 = vsel %vm28_vm0, %v409_v37, 0.0  ;;  %v444_v54 = vsel %vm28_vm0, %v411_v30, 0.0 }
  0xc2   :  { %132 = vadd.xlane.f32.xlu0 %v131_v62  ;;  %v606_v16 = vpop.eup %605 }
  0xc3   :  { %v140_v21 = vsel %vm28_vm0, %v606_v16, 0.0 }
  0xc4   :  { %285 = vadd.xlane.f32.xlu2 %v284_v4 }
  0xc6   :  { %144 = vadd.xlane.f32.xlu1 %v143_v6  ;;  %v224_v28 = vpop.permute.xlu1 %223 }
  0xc7   :  { %vm239_vm13 = vcmp.eq.s32.totalorder %v857_v5, %v224_v28 }
  0xc8   :  { %v252_v33 = vsel %vm239_vm13, %v79_v42, 0.0  ;;  %v412_v19 = vsel %vm239_vm13, %v949_v23, 0.0 }
  0xc9   :  { %v287_v34 = vsel %vm28_vm0, %v252_v33, 0.0  ;;  %v447_v48 = vsel %vm28_vm0, %v412_v19, 0.0 }
  0xca   :  { %270 = vadd.xlane.f32.xlu0 %v269_v8 }
  0xcc   :  { %415 = vadd.xlane.f32.xlu2 %v414_v15 }
  0xce   :  { %282 = vadd.xlane.f32.xlu1 %v281_v53 }
  0xd2   :  { %141 = vadd.xlane.f32.xlu0 %v140_v21 }
  0xd4   :  { %424 = vadd.xlane.f32.xlu2 %v423_v24 }
  0xd6   :  { %291 = vadd.xlane.f32.xlu1 %v290_v26 }
  0xda   :  { %279 = vadd.xlane.f32.xlu0 %v278_v18 }
  0xdc   :  { %433 = vadd.xlane.f32.xlu2 %v432_v20 }
  0xde   :  { %421 = vadd.xlane.f32.xlu1 %v420_v14 }
  0xe2   :  { %288 = vadd.xlane.f32.xlu0 %v287_v34 }
  0xe4   :  { %442 = vadd.xlane.f32.xlu2 %v441_v38 }
  0xe6   :  { %430 = vadd.xlane.f32.xlu1 %v429_v39 }
  0xea   :  { %418 = vadd.xlane.f32.xlu0 %v417_v41 }
  0xec   :  { %451 = vadd.xlane.f32.xlu2 %v450_v44 }
  0xee   :  { %439 = vadd.xlane.f32.xlu1 %v438_v45 }
  0xf2   :  { %427 = vadd.xlane.f32.xlu0 %v426_v46 }
  0xf6   :  { %448 = vadd.xlane.f32.xlu1 %v447_v48  ;;  %v115_v59 = vpop.xlane.xlu0 %114 }
  0xf7   :  { %v109_v50 = vpop.xlane.xlu2 %108 }
  0xf8   :  { %607 = vlog2.f32 %v109_v50 }
  0xfa   :  { %436 = vadd.xlane.f32.xlu0 %v435_v13 }
  0xfe   :  { %v608_v58 = vpop.eup %607 }
  0xff   :  { %v118_v52 = vpop.xlane.xlu2 %117  ;;  %v112_v55 = vpop.xlane.xlu1 %111  ;;  %v147_v3 = vmul.f32 0.6931472, %v608_v58 }
 0x100   :  { %609 = vlog2.f32 %v112_v55 }
 0x101   :  { %611 = vlog2.f32 %v115_v59 }
 0x102   :  { %445 = vadd.xlane.f32.xlu0 %v444_v54  ;;  %613 = vlog2.f32 %v118_v52 }
 0x105   :  { %v256_v42 = vpop.xlane.xlu0 %255 }
 0x106   :  { %v610_v2 = vpop.eup %609  ;;  %v1035_v7 = vsub.f32 %v256_v42, %v147_v3 }
 0x107   :  { %v124_v51 = vpop.xlane.xlu2 %123  ;;  %v121_v25 = vpop.xlane.xlu1 %120  ;;  %v149_v6 = vmul.f32 0.6931472, %v610_v2 }
 0x108   :  { %v612_v4 = vpop.eup %611  ;;  %615 = vlog2.f32 %v121_v25  ;;  %v306_v16 = vmul.f32 1.442695, %v1035_v7 }
 0x109   :  { %v614_v10 = vpop.eup %613  ;;  %617 = vlog2.f32 %v124_v51  ;;  %v151_v12 = vmul.f32 0.6931472, %v612_v4 }
 0x10a   :  { %v153_v53 = vmul.f32 0.6931472, %v614_v10 }
 0x10e   :  { %v616_v9 = vpop.eup %615 }
 0x10f   :  { %v127_v56 = vpop.xlane.xlu2 %126  ;;  %v618_v24 = vpop.eup %617  ;;  %v155_v28 = vmul.f32 0.6931472, %v616_v9 }
 0x110   :  { %619 = vlog2.f32 %v127_v56  ;;  %v157_v18 = vmul.f32 0.6931472, %v618_v24 }
 0x111   :  { %621 = vpow2.f32 %v306_v16 }
 0x116   :  { %v620_v20 = vpop.eup %619 }
 0x117   :  { %v265_v57 = vpop.xlane.xlu2 %264  ;;  %v622_v35 = vpop.eup %621  ;;  %v159_v36 = vmul.f32 0.6931472, %v620_v20 }
 0x118   :  { %v1043_v22 = vsub.f32 %v265_v57, %v153_v53  ;;  %v332_v46 = vsub.f32 1.0, %v622_v35 }
 0x119   :  { %v259_v47 = vpop.xlane.xlu1 %258 }
 0x11a   :  { %v1037_v11 = vsub.f32 %v259_v47, %v149_v6  ;;  %v312_v29 = vmul.f32 1.442695, %v1043_v22  ;;  %v345_v57 = vmax.f32 %v332_v46, 0.0 }
 0x11c   :  { %v308_v21 = vmul.f32 1.442695, %v1037_v11 }
 0x11e   :  { %623 = vpow2.f32 %v308_v21 }
 0x11f   :  { %v136_v61 = vpop.xlane.xlu2 %135 }
 0x121   :  { %v130_v60 = vpop.xlane.xlu1 %129 }
 0x122   :  { %625 = vlog2.f32 %v130_v60 }
 0x123   :  { %627 = vlog2.f32 %v136_v61 }
 0x124   :  { %v624_v38 = vpop.eup %623 }
 0x125   :  { %v333_v49 = vsub.f32 1.0, %v624_v38 }
 0x127   :  { %v274_v0 = vpop.xlane.xlu2 %273  ;;  %v346_v61 = vmax.f32 %v333_v49, 0.0 }
 0x128   :  { %v626_v41 = vpop.eup %625  ;;  %v1052_v43 = vsub.f32 %v274_v0, %v159_v36 }
 0x129   :  { %v268_v62 = vpop.xlane.xlu1 %267  ;;  %v628_v44 = vpop.eup %627  ;;  %v161_v19 = vmul.f32 0.6931472, %v626_v41 }
 0x12a   :  { %v1047_v14 = vsub.f32 %v268_v62, %v155_v28  ;;  %v165_v50 = vmul.f32 0.6931472, %v628_v44  ;;  %v318_v13 = vmul.f32 1.442695, %v1052_v43 }
 0x12c   :  { %v314_v39 = vmul.f32 1.442695, %v1047_v14 }
 0x12d   :  { %v262_v5 = vpop.xlane.xlu0 %261 }
 0x12e   :  { %v1040_v17 = vsub.f32 %v262_v5, %v151_v12  ;;  %v359_v12 = vmul.f32 %v346_v61, %v346_v61 }
 0x12f   :  { %v277_v8 = vpop.xlane.xlu2 %276 }
 0x130   :  { %v310_v27 = vmul.f32 1.442695, %v1040_v17  ;;  %v1058_v55 = vsub.f32 %v277_v8, %v161_v19  ;;  %v358_v8 = vmul.f32 %v345_v57, %v345_v57 }
 0x131   :  { %v139_v1 = vpop.xlane.xlu1 %138 }
 0x132   :  { %629 = vpow2.f32 %v310_v27  ;;  %v320_v58 = vmul.f32 1.442695, %v1058_v55 }
 0x135   :  { %v133_v23 = vpop.xlane.xlu0 %132 }
 0x136   :  { %631 = vlog2.f32 %v133_v23 }
 0x137   :  { %v286_v31 = vpop.xlane.xlu2 %285  ;;  %633 = vpow2.f32 %v312_v29 }
 0x138   :  { %v630_v45 = vpop.eup %629 }
 0x139   :  { %v145_v15 = vpop.xlane.xlu1 %144  ;;  %v334_v54 = vsub.f32 1.0, %v630_v45 }
 0x13a   :  { %635 = vlog2.f32 %v145_v15 }
 0x13b   :  { %637 = vlog2.f32 %v139_v1  ;;  %v347_v5 = vmax.f32 %v334_v54, 0.0 }
 0x13c   :  { %v632_v32 = vpop.eup %631  ;;  %639 = vpow2.f32 %v314_v39 }
 0x13d   :  { %v271_v26 = vpop.xlane.xlu0 %270  ;;  %v634_v48 = vpop.eup %633  ;;  %v163_v25 = vmul.f32 0.6931472, %v632_v32  ;;  %v360_v53 = vmul.f32 %v347_v5, %v347_v5 }
 0x13e   :  { %v1049_v33 = vsub.f32 %v271_v26, %v157_v18  ;;  %v335_v47 = vsub.f32 1.0, %v634_v48  ;;  %v371_v18 = vmul.f32 %v358_v8, %v1035_v7 }
 0x13f   :  { %v1056_v30 = vpop.xlane.xlu2 %415 }
 0x140   :  { %v316_v37 = vmul.f32 1.442695, %v1049_v33  ;;  %v636_v52 = vpop.eup %635  ;;  %v348_v10 = vmax.f32 %v335_v47, 0.0  ;;  %v384_v32 = vsub.f32 0.0, %v371_v18 }
 0x141   :  { %v283_v34 = vpop.xlane.xlu1 %282  ;;  %v638_v51 = vpop.eup %637  ;;  %v171_v42 = vmul.f32 0.6931472, %v636_v52 }
 0x142   :  { %641 = vpow2.f32 %v316_v37  ;;  %v1060_v56 = vsub.f32 %v283_v34, %v165_v50  ;;  %v640_v0 = vpop.eup %639  ;;  %v167_v1 = vmul.f32 0.6931472, %v638_v51  ;;  %v361_v29 = vmul.f32 %v348_v10, %v348_v10 }
 0x143   :  { %v336_v15 = vsub.f32 1.0, %v640_v0  ;;  %v372_v34 = vmul.f32 %v359_v12, %v1037_v11 }
 0x144   :  { %v324_v3 = vmul.f32 1.442695, %v1060_v56  ;;  %v1069_v16 = vsub.f32 %v286_v31, %v167_v1  ;;  %v374_v7 = vmul.f32 %v361_v29, %v1043_v22 }
 0x145   :  { %v142_v40 = vpop.xlane.xlu0 %141  ;;  %v349_v36 = vmax.f32 %v336_v15, 0.0  ;;  %v385_v48 = vsub.f32 0.0, %v372_v34 }
 0x146   :  { %643 = vlog2.f32 %v142_v40  ;;  %v326_v31 = vmul.f32 1.442695, %v1069_v16  ;;  %v373_v40 = vmul.f32 %v360_v53, %v1040_v17  ;;  %v387_v61 = vsub.f32 0.0, %v374_v7 }
 0x147   :  { %645 = vpow2.f32 %v318_v13  ;;  %v425_v26 = vpop.xlane.xlu2 %424  ;;  %v362_v19 = vmul.f32 %v349_v36, %v349_v36  ;;  %v453_v13 = vmul.f32 %v1056_v30, %v384_v32 }
 0x148   :  { %v642_v2 = vpop.eup %641  ;;  %v386_v17 = vsub.f32 0.0, %v373_v40 }
 0x149   :  { %v292_v59 = vpop.xlane.xlu1 %291  ;;  %v337_v9 = vsub.f32 1.0, %v642_v2 }
 0x14a   :  { %v1066_v4 = vsub.f32 %v292_v59, %v171_v42 }
 0x14b   :  { %v350_v41 = vmax.f32 %v337_v9, 0.0 }
 0x14c   :  { %v644_v23 = vpop.eup %643  ;;  %v330_v27 = vmul.f32 1.442695, %v1066_v4 }
 0x14d   :  { %v280_v60 = vpop.xlane.xlu0 %279  ;;  %v646_v21 = vpop.eup %645  ;;  %v169_v24 = vmul.f32 0.6931472, %v644_v23  ;;  %v363_v50 = vmul.f32 %v350_v41, %v350_v41 }
 0x14e   :  { %v1062_v62 = vsub.f32 %v280_v60, %v163_v25  ;;  %v338_v35 = vsub.f32 1.0, %v646_v21  ;;  %v375_v60 = vmul.f32 %v362_v19, %v1047_v14 }
 0x14f   :  { %v434_v57 = vpop.xlane.xlu2 %433  ;;  %v376_v5 = vmul.f32 %v363_v50, %v1049_v33 }
 0x150   :  { %v322_v6 = vmul.f32 1.442695, %v1062_v62  ;;  %v351_v11 = vmax.f32 %v338_v35, 0.0 }
 0x151   :  { %v422_v38 = vpop.xlane.xlu1 %421  ;;  %v389_v33 = vsub.f32 0.0, %v376_v5 }
 0x152   :  { %647 = vpow2.f32 %v322_v6  ;;  %v455_v47 = vmul.f32 %v422_v38, %v386_v17  ;;  %v364_v59 = vmul.f32 %v351_v11, %v351_v11 }
 0x153   :  { %649 = vpow2.f32 %v320_v58  ;;  %v521_v58 = vsel %vm520_vm14, %v453_v13, 0.0  ;;  %v467_v13 = vshrl.u32 %v187_v63, 7 }
 0x154   :  { %651 = vpow2.f32 %v324_v3  ;;  %v456_v3 = vmul.f32 %v425_v26, %v387_v61  ;;  %v524_v12 = vsel %vm520_vm14, %v455_v47, 0.0  ;;  %v377_v14 = vmul.f32 %v364_v59, %v1052_v43 }
 0x155   :  { %v289_v28 = vpop.xlane.xlu0 %288  ;;  %653 = vpow2.f32 %v330_v27  ;;  %v479_v61 = vadd.s32 96, %v467_v13 }
 0x156   :  { %v1073_v20 = vsub.f32 %v289_v28, %v169_v24  ;;  %v388_v24 = vsub.f32 0.0, %v375_v60  ;;  %v526_v28 = vsel %vm520_vm14, %v456_v3, 0.0 }
 0x157   :  { %v443_v40 = vpop.xlane.xlu2 %442  ;;  %vm506_vm15 = vcmp.lt.s32.totalorder %v479_v61, 100 }
 0x158   :  { %v648_v39 = vpop.eup %647  ;;  %v328_v37 = vmul.f32 1.442695, %v1073_v20 }
 0x159   :  { %v650_v44 = vpop.eup %649  ;;  %v340_v46 = vsub.f32 1.0, %v648_v39  ;;  %v431_v23 = vpop.xlane.xlu1 %430 }
 0x15a   :  { %v652_v45 = vpop.eup %651  ;;  %655 = vpow2.f32 %v328_v37  ;;  %v339_v49 = vsub.f32 1.0, %v650_v44  ;;  %v458_v35 = vmul.f32 %v431_v23, %v389_v33 }
 0x15b   :  { %657 = vpow2.f32 %v326_v31  ;;  %v341_v52 = vsub.f32 1.0, %v652_v45  ;;  %v654_v51 = vpop.eup %653  ;;  %v353_v25 = vmax.f32 %v340_v46, 0.0  ;;  %v390_v31 = vsub.f32 0.0, %v377_v14 }
 0x15c   :  { %v352_v0 = vmax.f32 %v339_v49, 0.0  ;;  %v344_v6 = vsub.f32 1.0, %v654_v51  ;;  %v530_v46 = vsel %vm520_vm14, %v458_v35, 0.0 }
 0x15d   :  { %v419_v54 = vpop.xlane.xlu0 %418  ;;  %v354_v2 = vmax.f32 %v341_v52, 0.0  ;;  %v366_v10 = vmul.f32 %v353_v25, %v353_v25  ;;  %v459_v44 = vmul.f32 %v434_v57, %v390_v31 }
 0x15e   :  { %v454_v22 = vmul.f32 %v419_v54, %v385_v48  ;;  %v365_v21 = vmul.f32 %v352_v0, %v352_v0  ;;  %v357_v18 = vmax.f32 %v344_v6, 0.0 }
 0x15f   :  { %v367_v27 = vmul.f32 %v354_v2, %v354_v2  ;;  %v379_v26 = vmul.f32 %v366_v10, %v1062_v62 }
 0x160   :  { %v656_v42 = vpop.eup %655  ;;  %v522_v30 = vsel %vm520_vm14, %v454_v22, 0.0  ;;  %v378_v39 = vmul.f32 %v365_v21, %v1058_v55  ;;  %v370_v37 = vmul.f32 %v357_v18, %v357_v18  ;;  %v532_v55 = vsel %vm520_vm14, %v459_v44, 0.0 }
 0x161   :  { %v658_v1 = vpop.eup %657  ;;  %v523_v8 = vadd.f32 %v522_v30, %v521_v58  ;;  %v343_v15 = vsub.f32 1.0, %v656_v42  ;;  %v380_v7 = vmul.f32 %v367_v27, %v1060_v56  ;;  %v392_v62 = vsub.f32 0.0, %v379_v26  ;;  %v440_v11 = vpop.xlane.xlu1 %439 }
 0x162   :  { %v342_v9 = vsub.f32 1.0, %v658_v1  ;;  %v391_v49 = vsub.f32 0.0, %v378_v39  ;;  %v383_v50 = vmul.f32 %v370_v37, %v1066_v4  ;;  %v452_v4 = vpop.xlane.xlu2 %451 }
 0x163   :  { %v525_v53 = vadd.f32 %v524_v12, %v523_v8  ;;  %v356_v34 = vmax.f32 %v343_v15, 0.0  ;;  %v393_v54 = vsub.f32 0.0, %v380_v7  ;;  %v461_v51 = vmul.f32 %v440_v11, %v392_v62 }
 0x164   :  { %v355_v43 = vmax.f32 %v342_v9, 0.0  ;;  %v396_v22 = vsub.f32 0.0, %v383_v50 }
 0x165   :  { %v428_v29 = vpop.xlane.xlu0 %427  ;;  %v527_v38 = vadd.f32 %v526_v28, %v525_v53  ;;  %v369_v32 = vmul.f32 %v356_v34, %v356_v34  ;;  %v462_v60 = vmul.f32 %v443_v40, %v393_v54  ;;  %v536_v42 = vsel %vm520_vm14, %v461_v51, 0.0 }
 0x166   :  { %v457_v36 = vmul.f32 %v428_v29, %v388_v24  ;;  %v368_v48 = vmul.f32 %v355_v43, %v355_v43  ;;  %v465_v58 = vmul.f32 %v452_v4, %v396_v22 }
 0x167   :  { %v382_v52 = vmul.f32 %v369_v32, %v1073_v20  ;;  %v538_v1 = vsel %vm520_vm14, %v462_v60, 0.0 }
 0x168   :  { %v528_v41 = vsel %vm520_vm14, %v457_v36, 0.0  ;;  %v381_v57 = vmul.f32 %v368_v48, %v1069_v16  ;;  %v519_v23 = vsel %vm506_vm15, %v465_v58, 0.0 }
 0x169   :  { %v529_v45 = vadd.f32 %v528_v41, %v527_v38  ;;  %v395_v0 = vsub.f32 0.0, %v382_v52  ;;  %v449_v20 = vpop.xlane.xlu1 %448  ;;  %v544_v15 = vsel %vm520_vm14, %v519_v23, 0.0 }
 0x16a   :  { %v394_v5 = vsub.f32 0.0, %v381_v57 }
 0x16b   :  { %v531_v19 = vadd.f32 %v530_v46, %v529_v45  ;;  %v464_v2 = vmul.f32 %v449_v20, %v395_v0 }
 0x16d   :  { %v437_v17 = vpop.xlane.xlu0 %436  ;;  %v533_v25 = vadd.f32 %v532_v55, %v531_v19  ;;  %v542_v10 = vsel %vm520_vm14, %v464_v2, 0.0 }
 0x16e   :  { %v460_v56 = vmul.f32 %v437_v17, %v391_v49 }
 0x170   :  { %v534_v47 = vsel %vm520_vm14, %v460_v56, 0.0 }
 0x171   :  { %v535_v59 = vadd.f32 %v534_v47, %v533_v25 }
 0x173   :  { %v537_v63 = vadd.f32 %v536_v42, %v535_v59 }
 0x175   :  { %v446_v30 = vpop.xlane.xlu0 %445  ;;  %v539_v3 = vadd.f32 %v538_v1, %v537_v63 }
 0x176   :  { %v463_v16 = vmul.f32 %v446_v30, %v394_v5 }
 0x178   :  { %v540_v6 = vsel %vm520_vm14, %v463_v16, 0.0 }
 0x179   :  { %v541_v8 = vadd.f32 %v540_v6, %v539_v3 }
 0x17b   :  { %v543_v12 = vadd.f32 %v542_v10, %v541_v8 }
 0x17d   :  { %v545_v14 = vadd.f32 %v544_v15, %v543_v12 }
 0x17f   :  { %546 = vadd.xlane.f32.xlu0 %v545_v14 }
 0x1f2   :  { %v547_v53 = vpop.xlane.xlu0 %546 }
 0x1f3   :  { %v548_v21 = vrot.slane %v547_v53, 4 }
 0x1f5   :  { %v549_v9 = vadd.f32 %v548_v21, %v547_v53 }
 0x1f7   :  { %v550_v33 = vrot.slane %v549_v9, 2 }
 0x1f9   :  { %v551_v24 = vadd.f32 %v550_v33, %v549_v9 }
 0x1fb   :  { %v552_v27 = vrot.slane %v551_v24, 1 }
 0x1fd   :  { %v553_v28 = vadd.f32 %v552_v27, %v551_v24 }
 0x1ff   :  { %573 = vpush %v553_v28 }
 0x230   :  { %s574_s14 = spop %573 }
 0x231   :  { %v555_v18 = vstv %s574_s14 }
 0x232   :  { %556 = vst [vmem:[#allocation2] sm:$0xff] %v555_v18 }
 0x233   :  { %567 = dma.vmem_to_hbm [thread:$0]  %s563_s13, 128, %s565_s11, [#allocation3]  }
 0x234   :  { %683 = dma.done.wait [#allocation3], 128  }
 0x235   :  { %684 = vsyncadd [#allocation3], 4294967168 }
 0x236   :  { %572 = vsyncpa [#allocation3], 1 }

</bundles_post_ra>
